<compile_context>
chip_gen: v5e
topology: v5e:2x2
jax: 0.10.0
libtpu: 0.0.40
codegen_flags: <defaults>
</compile_context>

<pallas_src>
import functools
import math

import jax
import jax.numpy as jnp
import numpy as np
from jax import lax
from jax.experimental import pallas as pl
from jax.experimental.pallas import tpu as pltpu


# --------------------------------------------------------------------------
# Kernels
# --------------------------------------------------------------------------
def _tc_matmul_kernel(x_ref, w_ref, shift_ref, o_ref):
    # x_ref: (rows, tt*V) pre-gathered im2col block; w_ref: (C_out, rows)
    acc = jnp.dot(w_ref[...], x_ref[...], preferred_element_type=jnp.float32)
    o_ref[...] = (acc + shift_ref[...]).astype(o_ref.dtype)


def _tc_im2col_kernel(x_ref, w_ref, shift_ref, o_ref, col_ref, *,
                      kernel_size, dilation, v, tt):
    # x_ref:   (C_in, (tt+hw)*V) contiguous overlapping input tile
    # w_ref:   (C_out, K*C_in)   BN-scale-folded, tap-folded weights
    # col_ref: (K*C_in, tt*V)    VMEM im2col staging (scratch)
    c_in = x_ref.shape[0]
    tt_v = tt * v
    for k in range(kernel_size):                       # static tap loop
        s = k * dilation * v
        col_ref[k * c_in:(k + 1) * c_in, :] = x_ref[:, s:s + tt_v]
    acc = jnp.dot(w_ref[...], col_ref[...], preferred_element_type=jnp.float32)
    o_ref[...] = (acc + shift_ref[...]).astype(o_ref.dtype)


def _tc_pertap_kernel(x_ref, w_ref, shift_ref, o_ref, *,
                      kernel_size, dilation, v, tt):
    # Large C_in: per-tap matmuls directly on slices of the overlapping tile
    # (contraction already fills the MXU; no staging copy at all).
    tt_v = tt * v
    acc = jnp.dot(w_ref[0], x_ref[:, 0:tt_v], preferred_element_type=jnp.float32)
    for k in range(1, kernel_size):
        s = k * dilation * v
        acc = acc + jnp.dot(w_ref[k], x_ref[:, s:s + tt_v],
                            preferred_element_type=jnp.float32)
    o_ref[...] = (acc + shift_ref[...]).astype(o_ref.dtype)


# --------------------------------------------------------------------------
# Wrapper
# --------------------------------------------------------------------------
def temporal_conv_bn(x, weight, bias, gamma, beta, running_mean, running_var,
                     *, kernel_size, stride=1, dilation=1, eps=1e-5,
                     max_time_tile=None):
    """x: (N, C_in, T, V) NCHW; weight: (C_out, C_in, K, 1) OIHW. Inference BN."""
    n, c_in, t, v = x.shape
    c_out = weight.shape[0]
    k_t = int(kernel_size)
    pad = (k_t + (k_t - 1) * (dilation - 1) - 1) // 2
    rf = (k_t - 1) * dilation + 1
    t_pad = t + 2 * pad
    t_out = (t_pad - rf) // stride + 1          # PyTorch conv output length
    hw = rf - 1                                  # halo width (timesteps)

    # ---- lane-friendly joint axis: keep time-tile granularity small --------
    v_eff = v
    if 128 // math.gcd(v_eff, 128) > 16:
        v_eff = -(-v // 8) * 8                   # e.g. 25-joint -> 32
    g = 128 // math.gcd(v_eff, 128)              # tt must be a multiple of g

    use_pre = (stride > 1) or (k_t == 1)         # wrapper-gathered im2col
    fold = (not use_pre) and (c_in < 128)        # in-kernel im2col tap folding

    itemsize = jnp.dtype(x.dtype).itemsize
    try:
        info = pltpu.get_tpu_info()
        vmem_cap = int(getattr(info, "vmem_capacity_bytes", 64 << 20))
    except Exception:
        vmem_cap = 64 << 20                      # conservative (v7x physical)

    # ---- time-tile choice: full VMEM accounting + lane cap -----------------
    # per-output-timestep bytes: double-buffered in tile + out tile, im2col
    # scratch, f32 accumulator.
    if use_pre:
        per_t = v_eff * (2 * k_t * c_in * itemsize + 2 * c_out * itemsize + 4 * c_out)
    elif fold:
        per_t = v_eff * ((2 + k_t) * c_in * itemsize + 2 * c_out * itemsize + 4 * c_out)
    else:
        per_t = v_eff * (2 * c_in * itemsize + 2 * c_out * itemsize + 4 * c_out)
    fixed = (2 * hw * v_eff * c_in * itemsize        # halo part of in tiles
             + 2 * k_t * c_out * c_in * itemsize     # weights (double-buffered)
             + 2 * 4 * c_out                         # shift
             + (256 << 10))                          # compiler-internal slack
    budget = min(10 << 20, vmem_cap // 4)            # fits v5e 16 MiB default scope

    tt = max(g, ((budget - fixed) // max(per_t, 1)) // g * g)
    lane_cap = 4096                                   # ~roofline at 512-1024 lanes
    tt = min(tt, max(g, (lane_cap // v_eff) // g * g))
    if max_time_tile is not None:
        tt = min(tt, max(g, (max_time_tile // g) * g))
    tt = min(tt, -(-t_out // g) * g)
    nt = -(-t_out // tt)
    if n * nt < 2 and t_out > g:                      # keep both v7x TCs busy
        half = -(-t_out // 2)
        tt = max(g, -(-half // g) * g)
        nt = -(-t_out // tt)
    tt_v = tt * v_eff

    # ---- fold BN (inference): scale -> weights, shift -> epilogue ----------
    inv_std = lax.rsqrt(running_var.astype(jnp.float32) + eps)
    scale = gamma.astype(jnp.float32) * inv_std                         # (C_out,)
    shift = ((bias.astype(jnp.float32) - running_mean.astype(jnp.float32)) * scale
             + beta.astype(jnp.float32)).reshape(c_out, 1)
    w_kio = jnp.transpose(weight[..., 0], (2, 0, 1)).astype(jnp.float32)  # (K,Co,Ci)
    w_kio = w_kio * scale[None, :, None]

    # ---- input prep ---------------------------------------------------------
    x_w = x if v_eff == v else jnp.pad(x, ((0, 0), (0, 0), (0, 0), (0, v_eff - v)))

    if use_pre:
        # Strided im2col at OUTPUT resolution -> kernel is a single matmul.
        t_need = (nt * tt - 1) * stride + hw + 1
        x_p = jnp.pad(x_w, ((0, 0), (0, 0), (pad, max(0, t_need - t - pad)), (0, 0)))
        t_idx = ((jnp.arange(k_t) * dilation)[:, None]
                 + (jnp.arange(nt * tt) * stride)[None, :])      # (K, nt*tt)
        xg = x_p[:, :, t_idx, :]                                  # (n,Ci,K,nt*tt,V)
        xg = xg.transpose(0, 2, 1, 3, 4).reshape(n, k_t, c_in, nt, tt, v_eff)
        x_in = xg.transpose(0, 3, 1, 2, 4, 5).reshape(n, nt, k_t * c_in, tt_v)
    else:
        # One contiguous overlapping tile per grid step (tile + its halo).
        t_in = nt * tt + hw
        x_p = jnp.pad(x_w, ((0, 0), (0, 0), (pad, t_in - t - pad), (0, 0)))
        x_in = jnp.stack([x_p[:, :, j * tt:j * tt + tt + hw, :] for j in range(nt)],
                         axis=1)
        x_in = x_in.reshape(n, nt, c_in, (tt + hw) * v_eff)

    # ---- kernel / spec selection -------------------------------------------
    if use_pre:
        kern = _tc_matmul_kernel
        w_arr = jnp.transpose(w_kio, (1, 0, 2)).reshape(c_out, k_t * c_in).astype(x.dtype)
        in_specs = [
            pl.BlockSpec((None, None, k_t * c_in, tt_v), lambda b, j: (b, j, 0, 0)),
            pl.BlockSpec((c_out, k_t * c_in), lambda b, j: (0, 0)),
            pl.BlockSpec((c_out, 1), lambda b, j: (0, 0)),
        ]
        scratch = []
    elif fold:
        kern = functools.partial(_tc_im2col_kernel, kernel_size=k_t,
                                 dilation=dilation, v=v_eff, tt=tt)
        w_arr = jnp.transpose(w_kio, (1, 0, 2)).reshape(c_out, k_t * c_in).astype(x.dtype)
        in_specs = [
            pl.BlockSpec((None, None, c_in, (tt + hw) * v_eff), lambda b, j: (b, j, 0, 0)),
            pl.BlockSpec((c_out, k_t * c_in), lambda b, j: (0, 0)),
            pl.BlockSpec((c_out, 1), lambda b, j: (0, 0)),
        ]
        scratch = [pltpu.VMEM((k_t * c_in, tt_v), x.dtype)]
    else:
        kern = functools.partial(_tc_pertap_kernel, kernel_size=k_t,
                                 dilation=dilation, v=v_eff, tt=tt)
        w_arr = w_kio.astype(x.dtype)                              # (K, C_out, C_in)
        in_specs = [
            pl.BlockSpec((None, None, c_in, (tt + hw) * v_eff), lambda b, j: (b, j, 0, 0)),
            pl.BlockSpec((k_t, c_out, c_in), lambda b, j: (0, 0, 0)),
            pl.BlockSpec((c_out, 1), lambda b, j: (0, 0)),
        ]
        scratch = []

    flops = 2 * n * nt * tt * v_eff * k_t * c_in * c_out
    bytes_accessed = int(x_in.size * itemsize + w_arr.size * itemsize
                         + shift.size * 4 + n * c_out * nt * tt_v * itemsize)
    need = int(fixed + per_t * tt)
    vmem_limit = int(min(max(2 * need, 32 << 20), (vmem_cap * 3) // 4))

    out_flat = pl.pallas_call(
        kern,
        out_shape=jax.ShapeDtypeStruct((n, c_out, nt * tt_v), x.dtype),
        grid_spec=pltpu.PrefetchScalarGridSpec(
            num_scalar_prefetch=0,
            grid=(n, nt),
            in_specs=in_specs,
            out_specs=pl.BlockSpec((None, c_out, tt_v), lambda b, j: (b, 0, j)),
            scratch_shapes=scratch,
        ),
        compiler_params=pltpu.CompilerParams(
            dimension_semantics=("parallel", "parallel"),
            vmem_limit_bytes=vmem_limit),
        cost_estimate=pl.CostEstimate(flops=int(flops), transcendentals=0,
                                      bytes_accessed=bytes_accessed),
    )(x_in, w_arr, shift)

    # Lane-dense slab -> NCHW; drop tile/joint padding (reshape + slice only).
    out = out_flat.reshape(n, c_out, nt * tt, v_eff)[:, :, :t_out, :v]
    return out


# --------------------------------------------------------------------------
# Reference + tests
# --------------------------------------------------------------------------
def _reference(x, weight, bias, gamma, beta, running_mean, running_var,
               *, kernel_size, stride=1, dilation=1, eps=1e-5):
    pad = (kernel_size + (kernel_size - 1) * (dilation - 1) - 1) // 2
    conv = lax.conv_general_dilated(
        x, weight,
        window_strides=(stride, 1),
        padding=((pad, pad), (0, 0)),
        rhs_dilation=(dilation, 1),
        dimension_numbers=("NCHW", "OIHW", "NCHW"))
    conv = conv + bias.reshape(1, -1, 1, 1)
    mean = running_mean.reshape(1, -1, 1, 1)
    var = running_var.reshape(1, -1, 1, 1)
    return (conv - mean) / jnp.sqrt(var + eps) * gamma.reshape(1, -1, 1, 1) \
        + beta.reshape(1, -1, 1, 1)


if __name__ == "__main__":
    def run_case(n, c_in, c_out, t, v, k, stride, dilation, max_time_tile=None,
                 dtype=jnp.float32, rtol=1e-4, atol=1e-4):
        key = jax.random.PRNGKey(0)
        ks = jax.random.split(key, 7)
        x = jax.random.normal(ks[0], (n, c_in, t, v), jnp.float32)
        weight = jax.random.normal(ks[1], (c_out, c_in, k, 1), jnp.float32) * 0.2
        bias = jax.random.normal(ks[2], (c_out,), jnp.float32) * 0.1
        gamma = 1.0 + 0.1 * jax.random.normal(ks[3], (c_out,), jnp.float32)
        beta = 0.1 * jax.random.normal(ks[4], (c_out,), jnp.float32)
        running_mean = 0.1 * jax.random.normal(ks[5], (c_out,), jnp.float32)
        running_var = jax.random.uniform(ks[6], (c_out,), jnp.float32,
                                         minval=0.5, maxval=1.5)

        x_d = x.astype(dtype)
        w_d = weight.astype(dtype)
        out = temporal_conv_bn(x_d, w_d, bias, gamma, beta,
                               running_mean, running_var,
                               kernel_size=k, stride=stride, dilation=dilation,
                               max_time_tile=max_time_tile)
        out = jax.block_until_ready(out)
        ref = _reference(x_d.astype(jnp.float32), w_d.astype(jnp.float32),
                         bias, gamma, beta, running_mean, running_var,
                         kernel_size=k, stride=stride, dilation=dilation)
        ref = jax.block_until_ready(ref)
        assert out.shape == ref.shape, (out.shape, ref.shape)
        np.testing.assert_allclose(np.asarray(out, dtype=np.float32),
                                   np.asarray(ref), rtol=rtol, atol=atol)

    # base: stride 1, single time tile, in-kernel im2col tap folding
    run_case(n=2, c_in=4, c_out=8, t=16, v=16, k=3, stride=1, dilation=1)
    # stride 2 + forced multi-tile: pre-gathered im2col at output resolution
    run_case(n=2, c_in=4, c_out=8, t=41, v=16, k=3, stride=2, dilation=1,
             max_time_tile=8)
    # dilation > 1
    run_case(n=2, c_in=4, c_out=8, t=16, v=16, k=3, stride=1, dilation=2)
    # pointwise (K == 1)
    run_case(n=2, c_in=4, c_out=8, t=16, v=16, k=1, stride=1, dilation=1)
    # lane-unfriendly V (25-joint skeleton) + n==1 -> V padding and >=2 time
    # tiles (exercises overlapping-tile halo path + megacore split)
    run_case(n=1, c_in=3, c_out=16, t=20, v=25, k=5, stride=1, dilation=1)
    # bf16 activations/weights (BN fold in f32, f32 MXU accumulation)
    run_case(n=2, c_in=4, c_out=8, t=16, v=16, k=3, stride=1, dilation=1,
             dtype=jnp.bfloat16, rtol=5e-2, atol=5e-2)

    print("KERNEL_OK")
</pallas_src>

<mosaic_0001>
module attributes {stable_mosaic.version = 11 : i64} {
  func.func @_tc_im2col_kernel(%arg0: i32, %arg1: i32, %arg2: memref<1x1x4x288xf32, #tpu.memory_space<vmem>>, %arg3: memref<8x12xf32, #tpu.memory_space<vmem>>, %arg4: memref<8x1xf32, #tpu.memory_space<vmem>>, %arg5: memref<1x8x256xf32, #tpu.memory_space<vmem>>, %arg6: memref<12x256xf32, #tpu.memory_space<vmem>>) attributes {dimension_semantics = [#tpu.dimension_semantics<parallel>, #tpu.dimension_semantics<parallel>], iteration_bounds = array<i64: 2, 1>, scalar_prefetch = 0 : i64, scratch_operands = 1 : i64, tpu.core_type = #tpu.core_type<tc>, window_params = [{transform_indices = @transform_0, window_bounds = array<i64: 1, 1, 4, 288>}, {pipeline_mode = #tpu.pipeline_mode<synchronous>, transform_indices = @transform_1, window_bounds = array<i64: 8, 12>}, {pipeline_mode = #tpu.pipeline_mode<synchronous>, transform_indices = @transform_2, window_bounds = array<i64: 8, 1>}, {transform_indices = @transform_3, window_bounds = array<i64: 1, 8, 256>}]} {
    %c0 = arith.constant 0 : index
    %c0_0 = arith.constant 0 : index
    %c0_1 = arith.constant 0 : index
    %c0_2 = arith.constant 0 : index
    %0 = vector.load %arg2[%c0, %c0_0, %c0_1, %c0_2] : memref<1x1x4x288xf32, #tpu.memory_space<vmem>>, vector<1x1x4x256xf32>
    %1 = vector.shape_cast %0 : vector<1x1x4x256xf32> to vector<4x256xf32>
    %c0_3 = arith.constant 0 : index
    %c0_4 = arith.constant 0 : index
    %2 = vector.load %arg6[%c0_3, %c0_4] : memref<12x256xf32, #tpu.memory_space<vmem>>, vector<4x256xf32>
    tpu.vector_store %arg6[%c0_3, %c0_4], %1 {strides = array<i32>} : memref<12x256xf32, #tpu.memory_space<vmem>>, vector<4x256xf32>,
    %c0_5 = arith.constant 0 : index
    %c0_6 = arith.constant 0 : index
    %c0_7 = arith.constant 0 : index
    %c16 = arith.constant 16 : index
    %3 = vector.load %arg2[%c0_5, %c0_6, %c0_7, %c16] : memref<1x1x4x288xf32, #tpu.memory_space<vmem>>, vector<1x1x4x256xf32>
    %4 = vector.shape_cast %3 : vector<1x1x4x256xf32> to vector<4x256xf32>
    %c4 = arith.constant 4 : index
    %c0_8 = arith.constant 0 : index
    %5 = vector.load %arg6[%c4, %c0_8] : memref<12x256xf32, #tpu.memory_space<vmem>>, vector<4x256xf32>
    tpu.vector_store %arg6[%c4, %c0_8], %4 {strides = array<i32>} : memref<12x256xf32, #tpu.memory_space<vmem>>, vector<4x256xf32>,
    %c0_9 = arith.constant 0 : index
    %c0_10 = arith.constant 0 : index
    %c0_11 = arith.constant 0 : index
    %c32 = arith.constant 32 : index
    %6 = vector.load %arg2[%c0_9, %c0_10, %c0_11, %c32] : memref<1x1x4x288xf32, #tpu.memory_space<vmem>>, vector<1x1x4x256xf32>
    %7 = vector.shape_cast %6 : vector<1x1x4x256xf32> to vector<4x256xf32>
    %c8 = arith.constant 8 : index
    %c0_12 = arith.constant 0 : index
    %8 = vector.load %arg6[%c8, %c0_12] : memref<12x256xf32, #tpu.memory_space<vmem>>, vector<4x256xf32>
    tpu.vector_store %arg6[%c8, %c0_12], %7 {strides = array<i32>} : memref<12x256xf32, #tpu.memory_space<vmem>>, vector<4x256xf32>,
    %c0_13 = arith.constant 0 : index
    %c0_14 = arith.constant 0 : index
    %9 = vector.load %arg3[%c0_13, %c0_14] : memref<8x12xf32, #tpu.memory_space<vmem>>, vector<8x12xf32>
    %c0_15 = arith.constant 0 : index
    %c0_16 = arith.constant 0 : index
    %10 = vector.load %arg6[%c0_15, %c0_16] : memref<12x256xf32, #tpu.memory_space<vmem>>, vector<12x256xf32>
    %cst = arith.constant dense<0.000000e+00> : vector<8x256xf32>
    %11 = tpu.matmul %9, %10, %cst {dimension_numbers = #tpu.dot_dimension_numbers<[1], [0], [0], [1], [0, 0, 1, 1], [], []>} : vector<8x12xf32>, vector<12x256xf32>, vector<8x256xf32> -> vector<8x256xf32>
    %c0_17 = arith.constant 0 : index
    %c0_18 = arith.constant 0 : index
    %12 = vector.load %arg4[%c0_17, %c0_18] : memref<8x1xf32, #tpu.memory_space<vmem>>, vector<8x1xf32>
    %13 = vector.broadcast %12 : vector<8x1xf32> to vector<8x256xf32>
    %14 = arith.addf %11, %13 : vector<8x256xf32>
    %c0_19 = arith.constant 0 : index
    %c0_20 = arith.constant 0 : index
    %c0_21 = arith.constant 0 : index
    %15 = vector.load %arg5[%c0_19, %c0_20, %c0_21] : memref<1x8x256xf32, #tpu.memory_space<vmem>>, vector<1x8x256xf32>
    %16 = vector.shape_cast %15 : vector<1x8x256xf32> to vector<8x256xf32>
    %17 = vector.shape_cast %14 : vector<8x256xf32> to vector<1x8x256xf32>
    tpu.vector_store %arg5[%c0_19, %c0_20, %c0_21], %17 {strides = array<i32>} : memref<1x8x256xf32, #tpu.memory_space<vmem>>, vector<1x8x256xf32>,
    return
  }
  func.func @transform_0(%arg0: i32, %arg1: i32) -> (i32, i32, i32, i32) {
    %c0_i32 = arith.constant 0 : i32
    %c0_i32_0 = arith.constant 0 : i32
    %c0_i32_1 = arith.constant 0 : i32
    return %arg0, %arg1, %c0_i32, %c0_i32_0 : i32, i32, i32, i32
  }
  func.func @transform_1(%arg0: i32, %arg1: i32) -> (i32, i32) {
    %c0_i32 = arith.constant 0 : i32
    %c0_i32_0 = arith.constant 0 : i32
    %c0_i32_1 = arith.constant 0 : i32
    return %c0_i32, %c0_i32_0 : i32, i32
  }
  func.func @transform_2(%arg0: i32, %arg1: i32) -> (i32, i32) {
    %c0_i32 = arith.constant 0 : i32
    %c0_i32_0 = arith.constant 0 : i32
    %c0_i32_1 = arith.constant 0 : i32
    return %c0_i32, %c0_i32_0 : i32, i32
  }
  func.func @transform_3(%arg0: i32, %arg1: i32) -> (i32, i32, i32) {
    %c0_i32 = arith.constant 0 : i32
    %c0_i32_0 = arith.constant 0 : i32
    return %arg0, %c0_i32, %arg1 : i32, i32, i32
  }
}

</mosaic_0001>

<bundles_post_ra>
// kernel: tpu_custom_call.1
= control target key start
LH: loop header
LB: loop body
LE: loop exit
PB: predicated region body
PF: predicated region fallthrough
CT: control target
= control target key end

     0   :  { %8 = vsyncpa [#allocation4], 0  ;;  %s781_s0 = inlined_call_operand.hbm [shape: f32[2,1,4,288], index: 0, kind: input, shape index: {}]   ;;  %s782_s1 = inlined_call_operand.vmem [shape: f32[8,12], index: 1, kind: input, shape index: {}]   ;;  %s783_s2 = inlined_call_operand.vmem [shape: f32[8,1], index: 2, kind: input, shape index: {}]   ;;  %s784_s3 = inlined_call_operand.hbm [shape: f32[2,8,256], index: 3, kind: output, shape index: {}]  }
   0x1   :  { %10 = vsyncpa [#allocation4 + $0x1], 0 }
   0x2   :  { %11 = vsyncpa [#allocation5], 0 }
   0x3   :  { %13 = vsyncpa [#allocation5 + $0x1], 0  ;;  %s654_s12 = smov 0   ;;  %s656_s13 = smov 0  }
   0x4   :  { %s658_s14 = smov 0   ;;  %s660_s15 = smov 0  }
   0x5   :  { %s662_s16 = smov 0   ;;  %s664_s17 = smov 0  }
   0x6 LB: > { %s431_s18 = sadd.s32 4294967295, %s629_s17   ;;  %s432_s19 = sadd.s32 4294967294, %s629_s17   ;;  %s629_s17 = sphi %s664_s17, %s19_s17   ;;  %s625_s16 = sphi %s662_s16, %s793_s16   ;;  %s621_s15 = sphi %s660_s15, %s792_s15   ;;  %s617_s14 = sphi %s658_s14, %s791_s14   ;;  %s613_s13 = sphi %s656_s13, %s790_s13   ;;  %s609_s12 = sphi %s654_s12, %s789_s12  }
   0x7   : > { %s31_s20 = sadd.s32 1, %s625_s16  ;;  %s40_s21 = sadd.s32 1, %s617_s14 }
   0x8   : > { %p33_p0 = scmp.ge.s32.totalorder %s31_s20, 2  ;;  %p47_p1 = scmp.ne.s32.totalorder %s617_s14, %s613_s13 }
   0x9   : > { %p48_p2 = scmp.eq.s32.totalorder %s629_s17, 0  ;;  %p53_p3 = scmp.ne.s32.totalorder %s613_s13, %s609_s12 }
   0xa   : > { %s795_s20 = smov (%p33_p0, %s31_s20), 0  ;;  %p54_p5 = scmp.eq.s32.totalorder %s431_s18, 0 }
   0xb   : > { %p695_p4 = por %p48_p2, %p47_p1  ;;  %s35_s23 = ssub.s32 %s625_s16, %s795_s20 }
   0xc   : > { %p121_p6 = scmp.eq.s32.totalorder %s431_s18, 1  ;;  %p38_p7 = scmp.eq.s32.totalorder %s35_s23, 0 }
   0xd   : > { %p701_p8 = por %p54_p5, %p53_p3  ;;  %p127_p10 = scmp.eq.s32.totalorder %s432_s19, 1 }
   0xe   : > { %p705_p9 = por %p121_p6, %p47_p1  ;;  %p434_p12 = scmp.ge.s32.totalorder %s629_s17, 2 }
   0xf   : > { %s710_s26 = scalar_select %p38_p7, %s617_s14, %s40_s21  }
  0x10   : > { %p712_p11 = por %p127_p10, %p53_p3  ;;  %p463_p13 = scmp.lt.s32.totalorder %s629_s17, 2 }
  0x11   : > { %s153_s28 = sand.u32 1, %s617_s14   ;;  %s449_s30 = smul.u32 12, %s625_s16 }
  0x12   : > { %s448_s29 = smul.u32 12, %s153_s28  ;;  %p456_p0 = pnand %p463_p13, %p695_p4 }
  0x13   : > { %p436_p2 = scmp.ge.s32.totalorder %s629_s17, 1  ;;  %s164_s6 = scalar_lea.hbm %s781_s0, %s449_s30 }
  0x14   : > { %s157_s7 = scalar_lea.vmem [#allocation3], %s448_s29  ;;  %s166_s9 = sshll.u32 %s164_s6, 4  ;;  %s167_s9 = int_to_ptr.hbm [resolvable:$true] %s166_s9 }
  0x15   : > { %s168_s8 = sshll.u32 %s157_s7, 4  ;;  %s154_s10 = scalar_lea.sflag [#allocation4], %s153_s28  ;;  %s169_s8 = int_to_ptr.vmem [resolvable:$true] %s168_s8 }
  0x16   : > { %458 = dma.hbm_to_vmem [thread:$0]  (!%p456_p0), %s167_s9, 192, %s169_s8, %s154_s10  }
  0x17   : > { %p173_p1 = scmp.lt.s32.totalorder %s629_s17, 3 }
  0x19   : > { %p174_p3 = pnand %p436_p2, %p173_p1 }
  0x1a   : > { %s728_s11 = sand.u32 (!%p174_p3), 1, %s613_s13  }
  0x1b   : > { %177 = sbr.rel (%p174_p3) target bundleno = 327 (0x147), region = 32  ;;  %s180_s19 = scalar_lea.sflag (!%p174_p3), [#allocation4], %s728_s11 }
  0x1c   : > { %s450_s18 = smul.u32 (!%p174_p3), 12, %s728_s11 }
  0x1e   : > { %s183_s21 = scalar_lea.vmem (!%p174_p3), [#allocation3], %s450_s18 }
  0x20   : > { %600 = dma.done.wait (%p701_p8), %s180_s19, 192  }
  0x21   : > { %602 = vsyncadd (%p701_p8), %s180_s19, 4294967104  ;;  %v218_v0 = vld [vmem:[%s183_s21 + $0x8] sm:$0xf]  ;;  %v208_v1 = vld [vmem:[%s183_s21] sm:$0xff]  ;;  %s631_s22 = smov 96   ;;  %s632_s23 = smov 112  }
  0x22   : > { %224 = vst [vmem:[#allocation1 + $0x11] ss:$2 sm:$0xff] %v218_v0  ;;  %v242_v2 = vld [vmem:[%s183_s21 + $0x8] sm:$0xf]  ;;  %vm234_vm0 = vcmask 916480   ;;  %v269_v15 = vld [vmem:[%s783_s2] sm:$0xff] }
  0x23   : > { %210 = vst [vmem:[#allocation1] ss:$2 sm:$0xff] %v208_v1  ;;  %v633_v16 = vmov 0   ;;  %vm257_vm1 = vcmask 785408   ;;  %vm279_vm2 = vcmask 1043456   ;;  %v264_v25 = vld [vmem:[%s782_s1] sm:$0xff] }
  0x24   : > { %516 = vset.pattern.permute.xlu0 %v633_v16  ;;  %vm275_vm3 = vcmask 97280   ;;  %s437_s4 = sshll.u32 %s728_s11, 4  ;;  %s447_s5 = sshll.u32 %s621_s15, 4 }
  0x25   : > { %s342_s8 = scalar_lea.hbm %s784_s3, %s447_s5  ;;  %s206_s9 = scalar_lea.vmem [#allocation6], %s437_s4 }
  0x26   : > { %s344_s10 = sshll.u32 %s206_s9, 4  ;;  %s346_s18 = sshll.u32 %s342_s8, 4  ;;  %s345_s10 = int_to_ptr.vmem [resolvable:$true] %s344_s10  ;;  %s347_s18 = int_to_ptr.hbm [resolvable:$true] %s346_s18 }
  0x27   : > { %s329_s19 = scalar_lea.sflag [#allocation5], %s728_s11  ;;  %s561_s21 = sshra.s32 %s347_s18, 4  ;;  %s562_s21 = int_to_ptr.hbm [resolvable:$true] %s561_s21 }
  0x28   : > { %s563_s15 = scalar_lea.hbm %s562_s21, 16  ;;  %s567_s24 = scalar_lea.hbm %s784_s3, 32 }
  0x29   : > { %v227_v3 = vld.sshfl [vmem:[#allocation1 + $0x10] sm:$0xff pattern:$0x75316420]  ;;  %p564_p4 = scmp.ne.s32.totalorder %s562_s21, %s563_s15  ;;  %p568_p7 = scmp.lt.s32.totalorder %s562_s21, %s784_s3 }
  0x2a   : > { %247 = vst [vmem:[#allocation1 + $0x10] ss:$2 sm:$0xff] %v242_v2  ;;  %v211_v4 = vld.sshfl [vmem:[#allocation1] sm:$0xff pattern:$0x75316420]  ;;  %p569_p8 = scmp.lt.s32.totalorder %s567_s24, %s563_s15 }
  0x2b   : > { %v212_v5 = vld.sshfl [vmem:[#allocation1 + $0x8] sm:$0xff pattern:$0x75316420]  ;;  %215 = vst [vmem:[#allocation2 + $0x10] sm:$0xf] %v211_v4  ;;  %p565_p5 = pnand %p564_p4, %p705_p9 }
  0x2c   : > { %222 = vst [vmem:[#allocation1 + $0x1] ss:$2 sm:$0xff] %v208_v1  ;;  %p570_p10 = por %p569_p8, %p568_p7 }
  0x2d   : > { %216 = vst [vmem:[#allocation2] sm:$0xf] %v212_v5  ;;  %p566_p6 = pneg %p565_p5 }
  0x2f   : > { %p571_p13 = pnand %p570_p10, %p566_p6 }
  0x31   : > { %v250_v6 = vld.sshfl [vmem:[#allocation1 + $0x10] sm:$0xff pattern:$0x75316420] }
  0x32   : > { %255 = vrot.lane.b32.xlu1 %v250_v6, %s631_s22 }
  0x33   : > { %v225_v7 = vld.sshfl [vmem:[#allocation1] sm:$0xff pattern:$0x75316420]  ;;  %v226_v8 = vld.sshfl [vmem:[#allocation1 + $0x8] sm:$0xff pattern:$0x75316420] }
  0x34   : > { %245 = vst [vmem:[#allocation1] ss:$2 sm:$0xff] %v208_v1  ;;  %230 = vrot.lane.b32.xlu2 %v226_v8, %s632_s23 }
  0x3a   : > { %228 = vrot.lane.b32.xlu1 %v225_v7, %s632_s23 }
  0x3b   : > { %v248_v9 = vld.sshfl [vmem:[#allocation1] sm:$0xff pattern:$0x75316420]  ;;  %v249_v10 = vld.sshfl [vmem:[#allocation1 + $0x8] sm:$0xff pattern:$0x75316420] }
  0x3c   : > { %251 = vrot.lane.b32.xlu0 %v248_v9, %s631_s22  ;;  %232 = vrot.lane.b32.xlu2 %v227_v3, %s632_s23 }
  0x44   : > { %253 = vrot.lane.b32.xlu0 %v249_v10, %s631_s22 }
  0x4c   : > { %272 = vperm.xlu0 %516, %v269_v15  }
  0x8e   : > { %v231_v11 = vpop.permute.xlu2 %230 }
  0x96   : > { %v233_v12 = vpop.permute.xlu2 %232 }
  0x97   : > { %v236_v13 = vsel %vm234_vm0, %v231_v11, %v233_v12 }
  0x98   : > { %240 = vst [vmem:[#allocation2] sm:$0xf0] %v236_v13 }
  0x9f   : > { %v266_v27 = vld [vmem:[#allocation2] sm:$0xff] }
  0xa4   : > { %v256_v14 = vpop.permute.xlu1 %255 }
  0xac   : > { %v229_v17 = vpop.permute.xlu1 %228 }
  0xad   : > { %v235_v18 = vsel %vm234_vm0, %v229_v17, %v231_v11 }
  0xae   : > { %v252_v19 = vpop.permute.xlu0 %251  ;;  %239 = vst [vmem:[#allocation2 + $0x10] sm:$0xf0] %v235_v18 }
  0xb5   : > { %v265_v26 = vld [vmem:[#allocation2 + $0x10] sm:$0xff] }
  0xb6   : > { %v254_v20 = vpop.permute.xlu0 %253 }
  0xb7   : > { %v258_v21 = vsel %vm257_vm1, %v252_v19, %v254_v20  ;;  %v259_v22 = vsel %vm257_vm1, %v254_v20, %v256_v14 }
  0xb8   : > { %262 = vst [vmem:[#allocation2 + $0x18] sm:$0xf] %v258_v21 }
  0xb9   : > { %263 = vst [vmem:[#allocation2 + $0x8] sm:$0xf] %v259_v22 }
  0xbe   : > { %v273_v28 = vpop.permute.xlu0 %272 }
  0xbf   : > { %v267_v23 = vld [vmem:[#allocation2 + $0x18] sm:$0xf] }
  0xc0   : > { %438 = vmatpush.msk.msra.mxu0 %vm279_vm2, %v267_v23  ;;  %v268_v24 = vld [vmem:[#allocation2 + $0x8] sm:$0xf] }
  0xc1   : > { %440 = vmatpush.msk.msra.mxu1 %vm279_vm2, %v268_v24 }
  0xc2   : > { %301 = vmatpush.msra.mxu0 %v265_v26 }
  0xc3   : > { %321 = vmatpush.msra.mxu1 %v266_v27  ;;  %439 = vmatmul.msk.f32.vlgmr.msra.gmra.mxu0 %vm275_vm3, %v264_v25 }
  0xc4   : > { %441 = vmatmul.msk.f32.vlgmr.msra.gmra.mxu1 %vm275_vm3, %v264_v25 }
 0x140   : > { %v303_v29 = vpop.f32.mrf.mxu0 }
 0x141   : > { %v323_v30 = vpop.f32.mrf.mxu1  ;;  %v304_v31 = vadd.f32 %v303_v29, %v273_v28 }
 0x142   : > { %v324_v32 = vadd.f32 %v323_v30, %v273_v28 }
 0x143   : > { %326 = vst [vmem:[%s206_s9] sm:$0xff] %v304_v31 }
 0x144   : > { %327 = vst [vmem:[%s206_s9 + $0x8] sm:$0xff] %v324_v32 }
 0x145   : > { %574 = shalt.err (!%p571_p13)
}
 0x146   : > { %453 = dma.vmem_to_hbm [thread:$0]  (%p705_p9), %s345_s10, 256, %s347_s18, %s329_s19  }
 0x147 PF: > { %s358_s11 = sand.u32 1, %s609_s12   ;;  %p460_p0 = pnand %p434_p12, %p712_p11 }
 0x148   : > { %s359_s30 = scalar_lea.sflag [#allocation5], %s358_s11 }
 0x149   : > { %p461_p2 = pneg %p460_p0 }
 0x14b   : > { %604 = dma.done.wait (%p461_p2), %s359_s30, 256  }
 0x14c   : > { %606 = vsyncadd (%p461_p2), %s359_s30, 4294967040  ;;  %s19_s17 = sadd.s32 1, %s629_s17   ;;  %s789_s12 = smov %s613_s13 }
 0x14d   : > { %p16_p1 = scmp.ge.s32.totalorder %s19_s17, 4   ;;  %s790_s13 = smov %s617_s14 }
 0x14e   : > { %s791_s14 = smov %s710_s26  ;;  %s792_s15 = smov %s625_s16 }
 0x14f   : > { %s793_s16 = smov %s795_s20  ;;  %18 = sbr.rel (!%p16_p1) target bundleno = 6 (0x6), region = 80 }
 0x154   :  { %365 = vsyncpa [#allocation4], 1 }
 0x155   :  { %367 = vsyncpa [#allocation4 + $0x1], 1 }
 0x156   :  { %368 = vsyncpa [#allocation5], 1 }
 0x157   :  { %370 = vsyncpa [#allocation5 + $0x1], 1 }

</bundles_post_ra>
